<compile_context>
chip_gen: v7x
topology: tpu7x:2x2x1
jax: 0.10.0
libtpu: 0.0.40
codegen_flags: <defaults>
</compile_context>

<pallas_src>
import functools

import jax
import jax.numpy as jnp
from jax.experimental import pallas as pl
from jax.experimental.pallas import tpu as pltpu


# ----------------------------- Fused BiLSTM + Linear kernel -----------------------------
def bilstm_fused_kernel(x_ref, wih_ref, whh_ref, b_ref, wef_ref, web_ref,
                        be_ref, o_ref, xg_sc, hf_sc, hb_sc, *, T, Bp, H):
    """Fused bidirectional LSTM + embedding Linear (single invocation, no grid).

    x_ref  : (T*Bp, 2*nIn) bf16  row-block t holds [x_t | x_{T-1-t}]
    wih_ref: (2*nIn, 8H)   bf16  stacked input weights, gate-interleaved columns
    whh_ref: (2H, 8H)      bf16  block-diag recurrent weights, gate-interleaved
    b_ref  : (1, 8H)       f32   b_ih + b_hh, gate-interleaved
    wef_ref: (H, nOut)     bf16  fwd half of W_emb^T
    web_ref: (H, nOut)     bf16  bwd half of W_emb^T
    be_ref : (1, nOut)     f32   embedding bias
    o_ref  : (T*Bp, nOut)  f32   output (wrapper reshapes / slices batch padding)
    xg_sc  : (T*Bp, 8H)    f32   hoisted input-gate projections
    hf_sc  : (T*Bp, H)     f32   fwd hidden history (output-time order)
    hb_sc  : (T*Bp, H)     f32   bwd hidden history (output-time order)
    """
    # ---- Phase 1: hoisted input projection, both directions & all timesteps ----
    xg_sc[...] = (
        jnp.dot(x_ref[...], wih_ref[...], preferred_element_type=jnp.float32)
        + b_ref[...])

    whh = whh_ref[...]                        # resident across the recurrence

    # Hoisted activation constants.  Gate-interleaved layout puts the
    # cell-candidate (tanh) lanes at columns [4H, 6H); everything else is a
    # sigmoid computed as 0.5*tanh(0.5*x)+0.5 so only ONE tanh runs per step.
    lane = jax.lax.broadcasted_iota(jnp.int32, (Bp, 8 * H), 1)
    is_g = (lane >= 4 * H) & (lane < 6 * H)
    scale = jnp.where(is_g, 1.0, 0.5).astype(jnp.float32)
    offset = jnp.where(is_g, 0.0, 0.5).astype(jnp.float32)

    # ---- Phase 2: serial recurrence, fwd+bwd fused into one wide cell ----
    def step(t, carry):
        h, c = carry                                      # (Bp, 2H) f32, [fwd | bwd]
        row_t = pl.multiple_of(t * Bp, Bp)
        row_r = pl.multiple_of((T - 1 - t) * Bp, Bp)

        # Single wide MXU dot covers both directions (block-diag recurrent weight).
        gates = xg_sc[pl.ds(row_t, Bp), :] + jnp.dot(
            h.astype(jnp.bfloat16), whh, preferred_element_type=jnp.float32)

        act = jnp.tanh(gates * scale) * scale + offset    # one EUP pass over (Bp, 8H)
        i_g = act[:, 0 * H:2 * H]
        f_g = act[:, 2 * H:4 * H]
        g_g = act[:, 4 * H:6 * H]
        o_g = act[:, 6 * H:8 * H]
        c_new = f_g * c + i_g * g_g
        h_new = o_g * jnp.tanh(c_new)

        # Write h-history; the embedding Linear is applied after the loop.
        hf_sc[pl.ds(row_t, Bp), :] = h_new[:, :H]         # fwd h -> output time t
        hb_sc[pl.ds(row_r, Bp), :] = h_new[:, H:]         # bwd h -> output time T-1-t
        return h_new, c_new

    z = jnp.zeros((Bp, 2 * H), jnp.float32)
    # Full unroll for short sequences; partial unroll keeps code size bounded
    # while preserving cross-iteration scheduling visibility for long T.
    jax.lax.fori_loop(0, T, step, (z, z), unroll=True if T <= 32 else 8)

    # ---- Phase 3: hoisted embedding Linear — bulk matmuls, one dense store ----
    o_ref[...] = (
        jnp.dot(hf_sc[...].astype(jnp.bfloat16), wef_ref[...],
                preferred_element_type=jnp.float32)
        + jnp.dot(hb_sc[...].astype(jnp.bfloat16), web_ref[...],
                  preferred_element_type=jnp.float32)
        + be_ref[...])


# ----------------------------- Module wrapper -----------------------------
def _interleave_gates(wf, wb, H):
    """Per-gate interleave of the trailing 4H axis -> [i_f,i_b,f_f,f_b,g_f,g_b,o_f,o_b]."""
    parts = []
    for g in range(4):
        parts.append(wf[..., g * H:(g + 1) * H])
        parts.append(wb[..., g * H:(g + 1) * H])
    return jnp.concatenate(parts, axis=-1)


def bidirectional_lstm_forward(x, params):
    """x: (T, B, nIn) -> (T, B, nOut).  Single fused pallas_call (no grid)."""
    T, B, nIn = x.shape
    H = params["w_hh_f"].shape[0]
    nOut = params["w_emb_t"].shape[1]
    Bp = ((B + 7) // 8) * 8          # pad batch to a sublane multiple -> aligned slabs
    f32, bf16 = jnp.float32, jnp.bfloat16

    # --- one-time weight plumbing (free XLA ops, outside the kernel) ---
    zi = jnp.zeros_like(params["w_ih_f"])
    wih_cat = jnp.concatenate(
        [_interleave_gates(params["w_ih_f"], zi, H),
         _interleave_gates(zi, params["w_ih_b"], H)], axis=0).astype(bf16)    # (2*nIn, 8H)
    b_all = _interleave_gates(params["b_f"], params["b_b"], H).astype(f32)    # (1, 8H)
    zh = jnp.zeros_like(params["w_hh_f"])
    whh_blk = jnp.concatenate(
        [_interleave_gates(params["w_hh_f"], zh, H),
         _interleave_gates(zh, params["w_hh_b"], H)], axis=0).astype(bf16)    # (2H, 8H)
    wef = params["w_emb_t"][:H, :].astype(bf16)                               # (H, nOut)
    web = params["w_emb_t"][H:, :].astype(bf16)                               # (H, nOut)
    be = params["b_emb"].reshape(1, nOut).astype(f32)

    # --- input plumbing: pad batch, pair x_t with x_{T-1-t} along K ---
    x_pad = jnp.pad(x, ((0, 0), (0, Bp - B), (0, 0)))                         # (T, Bp, nIn)
    x_fwd = x_pad.reshape(T * Bp, nIn)
    x_bwd = x_pad[::-1].reshape(T * Bp, nIn)                                  # time-reversed
    x_cat = jnp.concatenate([x_fwd, x_bwd], axis=1).astype(bf16)              # (T*Bp, 2*nIn)

    kernel = functools.partial(bilstm_fused_kernel, T=T, Bp=Bp, H=H)
    out_flat = pl.pallas_call(
        kernel,
        out_shape=jax.ShapeDtypeStruct((T * Bp, nOut), f32),
        in_specs=[pl.BlockSpec(memory_space=pltpu.MemorySpace.VMEM)] * 7,
        out_specs=pl.BlockSpec(memory_space=pltpu.MemorySpace.VMEM),
        scratch_shapes=[
            pltpu.VMEM((T * Bp, 8 * H), f32),   # hoisted input-gate projections
            pltpu.VMEM((T * Bp, H), f32),       # fwd h history
            pltpu.VMEM((T * Bp, H), f32),       # bwd h history
        ],
        compiler_params=pltpu.CompilerParams(
            vmem_limit_bytes=32 * 1024 * 1024),
    )(x_cat, wih_cat, whh_blk, b_all, wef, web, be)

    return out_flat.reshape(T, Bp, nOut)[:, :B, :]


# ----------------------------- Pure-JAX reference (f32) -----------------------------
def lstm_dir_ref(x, w_ih, w_hh, bias, reverse):
    T, B, _ = x.shape
    H = w_hh.shape[0]
    xs = x[::-1] if reverse else x

    def step(carry, x_t):
        h, c = carry
        g = x_t @ w_ih + h @ w_hh + bias
        i = jax.nn.sigmoid(g[:, 0 * H:1 * H])
        f = jax.nn.sigmoid(g[:, 1 * H:2 * H])
        gg = jnp.tanh(g[:, 2 * H:3 * H])
        o = jax.nn.sigmoid(g[:, 3 * H:4 * H])
        c = f * c + i * gg
        h = o * jnp.tanh(c)
        return (h, c), h

    init = (jnp.zeros((B, H), jnp.float32), jnp.zeros((B, H), jnp.float32))
    _, hs = jax.lax.scan(step, init, xs)
    return hs[::-1] if reverse else hs


def forward_ref(x, params):
    T, B, _ = x.shape
    h_f = lstm_dir_ref(x, params["w_ih_f"], params["w_hh_f"], params["b_f"], False)
    h_b = lstm_dir_ref(x, params["w_ih_b"], params["w_hh_b"], params["b_b"], True)
    rec = jnp.concatenate([h_f, h_b], axis=-1).reshape(T * B, -1)
    out = rec @ params["w_emb_t"] + params["b_emb"]
    return out.reshape(T, B, -1)


# ----------------------------- Main -----------------------------
if __name__ == "__main__":
    T, B = 8, 2
    nIn, nHidden, nOut = 16, 32, 16

    key = jax.random.PRNGKey(0)
    ks = jax.random.split(key, 12)
    scale = 1.0 / jnp.sqrt(nHidden)

    def u(k, shape):
        return jax.random.uniform(k, shape, jnp.float32, -scale, scale)

    # PyTorch LSTM params: weight_ih (4H, nIn), weight_hh (4H, H), biases (4H,)
    # stored pre-transposed for x @ W^T layout, the two biases pre-summed.
    params = {
        "w_ih_f": u(ks[0], (4 * nHidden, nIn)).T,
        "w_hh_f": u(ks[1], (4 * nHidden, nHidden)).T,
        "b_f": (u(ks[2], (4 * nHidden,)) + u(ks[3], (4 * nHidden,))).reshape(1, -1),
        "w_ih_b": u(ks[4], (4 * nHidden, nIn)).T,
        "w_hh_b": u(ks[5], (4 * nHidden, nHidden)).T,
        "b_b": (u(ks[6], (4 * nHidden,)) + u(ks[7], (4 * nHidden,))).reshape(1, -1),
        # Linear: weight (nOut, 2H) -> transposed, bias (nOut,)
        "w_emb_t": u(ks[8], (nOut, 2 * nHidden)).T,
        "b_emb": u(ks[9], (nOut,)).reshape(1, -1),
    }
    params = {k: jnp.asarray(v, jnp.float32) for k, v in params.items()}

    x = jax.random.normal(ks[10], (T, B, nIn), jnp.float32)

    out = bidirectional_lstm_forward(x, params)
    out = jax.block_until_ready(out)

    ref = jax.block_until_ready(forward_ref(x, params))
    assert out.shape == (T, B, nOut)
    # bf16 matmul operands (f32 accumulation) vs. a pure-f32 reference:
    # tolerance loosened per the review's correctness note.
    assert jnp.allclose(out, ref, atol=3e-2, rtol=3e-2), "mismatch vs reference"

    print("KERNEL_OK")
</pallas_src>

<mosaic_0001>
module attributes {stable_mosaic.version = 11 : i64} {
  func.func @bilstm_fused_kernel(%arg0: memref<64x32xbf16, #tpu.memory_space<vmem>>, %arg1: memref<32x256xbf16, #tpu.memory_space<vmem>>, %arg2: memref<64x256xbf16, #tpu.memory_space<vmem>>, %arg3: memref<1x256xf32, #tpu.memory_space<vmem>>, %arg4: memref<32x16xbf16, #tpu.memory_space<vmem>>, %arg5: memref<32x16xbf16, #tpu.memory_space<vmem>>, %arg6: memref<1x16xf32, #tpu.memory_space<vmem>>, %arg7: memref<64x16xf32, #tpu.memory_space<vmem>>, %arg8: memref<64x256xf32, #tpu.memory_space<vmem>>, %arg9: memref<64x32xf32, #tpu.memory_space<vmem>>, %arg10: memref<64x32xf32, #tpu.memory_space<vmem>>) attributes {dimension_semantics = [], scalar_prefetch = 0 : i64, scratch_operands = 3 : i64, tpu.core_type = #tpu.core_type<tc>} {
    %c0 = arith.constant 0 : index
    %c0_0 = arith.constant 0 : index
    %0 = vector.load %arg0[%c0, %c0_0] : memref<64x32xbf16, #tpu.memory_space<vmem>>, vector<64x32xbf16>
    %c0_1 = arith.constant 0 : index
    %c0_2 = arith.constant 0 : index
    %1 = vector.load %arg1[%c0_1, %c0_2] : memref<32x256xbf16, #tpu.memory_space<vmem>>, vector<32x256xbf16>
    %cst = arith.constant dense<0.000000e+00> : vector<64x256xf32>
    %2 = tpu.matmul %0, %1, %cst {dimension_numbers = #tpu.dot_dimension_numbers<[1], [0], [0], [1], [0, 0, 1, 1], [], []>} : vector<64x32xbf16>, vector<32x256xbf16>, vector<64x256xf32> -> vector<64x256xf32>
    %c0_3 = arith.constant 0 : index
    %c0_4 = arith.constant 0 : index
    %3 = vector.load %arg3[%c0_3, %c0_4] : memref<1x256xf32, #tpu.memory_space<vmem>>, vector<1x256xf32>
    %4 = vector.broadcast %3 : vector<1x256xf32> to vector<64x256xf32>
    %5 = arith.addf %2, %4 : vector<64x256xf32>
    %c0_5 = arith.constant 0 : index
    %c0_6 = arith.constant 0 : index
    %6 = vector.load %arg8[%c0_5, %c0_6] : memref<64x256xf32, #tpu.memory_space<vmem>>, vector<64x256xf32>
    tpu.vector_store %arg8[%c0_5, %c0_6], %5 {strides = array<i32>} : memref<64x256xf32, #tpu.memory_space<vmem>>, vector<64x256xf32>,
    %c0_7 = arith.constant 0 : index
    %c0_8 = arith.constant 0 : index
    %7 = vector.load %arg2[%c0_7, %c0_8] : memref<64x256xbf16, #tpu.memory_space<vmem>>, vector<64x256xbf16>
    %8 = tpu.iota {dimensions = array<i32: 1>} : vector<8x256xi32>
    %c128_i32 = arith.constant 128 : i32
    %9 = vector.broadcast %c128_i32 : i32 to vector<8x256xi32>
    %10 = arith.cmpi sge, %8, %9 : vector<8x256xi32>
    %c192_i32 = arith.constant 192 : i32
    %11 = vector.broadcast %c192_i32 : i32 to vector<8x256xi32>
    %12 = arith.cmpi slt, %8, %11 : vector<8x256xi32>
    %13 = arith.andi %10, %12 : vector<8x256xi1>
    %cst_9 = arith.constant 1.000000e+00 : f32
    %cst_10 = arith.constant 5.000000e-01 : f32
    %14 = vector.broadcast %cst_9 : f32 to vector<8x256xf32>
    %15 = vector.broadcast %cst_10 : f32 to vector<8x256xf32>
    %16 = arith.select %13, %14, %15 : vector<8x256xi1>, vector<8x256xf32>
    %cst_11 = arith.constant 0.000000e+00 : f32
    %cst_12 = arith.constant 5.000000e-01 : f32
    %17 = vector.broadcast %cst_11 : f32 to vector<8x256xf32>
    %18 = vector.broadcast %cst_12 : f32 to vector<8x256xf32>
    %19 = arith.select %13, %17, %18 : vector<8x256xi1>, vector<8x256xf32>
    %cst_13 = arith.constant 0.000000e+00 : f32
    %20 = vector.broadcast %cst_13 : f32 to vector<8x64xf32>
    %c0_i32 = arith.constant 0 : i32
    %c8_i32 = arith.constant 8 : i32
    %21 = arith.muli %c0_i32, %c8_i32 : i32
    %22 = tpu.assume_multiple %21, 8 : i32
    %c7_i32 = arith.constant 7 : i32
    %23 = arith.subi %c7_i32, %c0_i32 : i32
    %c8_i32_14 = arith.constant 8 : i32
    %24 = arith.muli %23, %c8_i32_14 : i32
    %25 = tpu.assume_multiple %24, 8 : i32
    %26 = arith.index_cast %22 : i32 to index
    %c0_15 = arith.constant 0 : index
    %27 = vector.load %arg8[%26, %c0_15] : memref<64x256xf32, #tpu.memory_space<vmem>>, vector<8x256xf32>
    %28 = arith.truncf %20 : vector<8x64xf32> to vector<8x64xbf16>
    %cst_16 = arith.constant dense<0.000000e+00> : vector<8x256xf32>
    %29 = tpu.matmul %28, %7, %cst_16 {dimension_numbers = #tpu.dot_dimension_numbers<[1], [0], [0], [1], [0, 0, 1, 1], [], []>} : vector<8x64xbf16>, vector<64x256xbf16>, vector<8x256xf32> -> vector<8x256xf32>
    %30 = arith.addf %27, %29 : vector<8x256xf32>
    %31 = arith.mulf %30, %16 : vector<8x256xf32>
    %32 = math.tanh %31 : vector<8x256xf32>
    %33 = arith.mulf %32, %16 : vector<8x256xf32>
    %34 = arith.addf %33, %19 : vector<8x256xf32>
    %35 = vector.extract_strided_slice %34 {offsets = [0, 0], sizes = [8, 64], strides = [1, 1]} : vector<8x256xf32> to vector<8x64xf32>
    %36 = vector.extract_strided_slice %34 {offsets = [0, 64], sizes = [8, 64], strides = [1, 1]} : vector<8x256xf32> to vector<8x64xf32>
    %37 = vector.extract_strided_slice %34 {offsets = [0, 128], sizes = [8, 64], strides = [1, 1]} : vector<8x256xf32> to vector<8x64xf32>
    %38 = vector.extract_strided_slice %34 {offsets = [0, 192], sizes = [8, 64], strides = [1, 1]} : vector<8x256xf32> to vector<8x64xf32>
    %39 = arith.mulf %36, %20 : vector<8x64xf32>
    %40 = arith.mulf %35, %37 : vector<8x64xf32>
    %41 = arith.addf %39, %40 : vector<8x64xf32>
    %42 = math.tanh %41 : vector<8x64xf32>
    %43 = arith.mulf %38, %42 : vector<8x64xf32>
    %44 = vector.extract_strided_slice %43 {offsets = [0, 0], sizes = [8, 32], strides = [1, 1]} : vector<8x64xf32> to vector<8x32xf32>
    %45 = arith.index_cast %22 : i32 to index
    %c0_17 = arith.constant 0 : index
    %46 = vector.load %arg9[%45, %c0_17] : memref<64x32xf32, #tpu.memory_space<vmem>>, vector<8x32xf32>
    tpu.vector_store %arg9[%45, %c0_17], %44 {strides = array<i32>} : memref<64x32xf32, #tpu.memory_space<vmem>>, vector<8x32xf32>,
    %47 = vector.extract_strided_slice %43 {offsets = [0, 32], sizes = [8, 32], strides = [1, 1]} : vector<8x64xf32> to vector<8x32xf32>
    %48 = arith.index_cast %25 : i32 to index
    %c0_18 = arith.constant 0 : index
    %49 = vector.load %arg10[%48, %c0_18] : memref<64x32xf32, #tpu.memory_space<vmem>>, vector<8x32xf32>
    tpu.vector_store %arg10[%48, %c0_18], %47 {strides = array<i32>} : memref<64x32xf32, #tpu.memory_space<vmem>>, vector<8x32xf32>,
    %c1_i32 = arith.constant 1 : i32
    %c8_i32_19 = arith.constant 8 : i32
    %50 = arith.muli %c1_i32, %c8_i32_19 : i32
    %51 = tpu.assume_multiple %50, 8 : i32
    %c7_i32_20 = arith.constant 7 : i32
    %52 = arith.subi %c7_i32_20, %c1_i32 : i32
    %c8_i32_21 = arith.constant 8 : i32
    %53 = arith.muli %52, %c8_i32_21 : i32
    %54 = tpu.assume_multiple %53, 8 : i32
    %55 = arith.index_cast %51 : i32 to index
    %c0_22 = arith.constant 0 : index
    %56 = vector.load %arg8[%55, %c0_22] : memref<64x256xf32, #tpu.memory_space<vmem>>, vector<8x256xf32>
    %57 = arith.truncf %43 : vector<8x64xf32> to vector<8x64xbf16>
    %cst_23 = arith.constant dense<0.000000e+00> : vector<8x256xf32>
    %58 = tpu.matmul %57, %7, %cst_23 {dimension_numbers = #tpu.dot_dimension_numbers<[1], [0], [0], [1], [0, 0, 1, 1], [], []>} : vector<8x64xbf16>, vector<64x256xbf16>, vector<8x256xf32> -> vector<8x256xf32>
    %59 = arith.addf %56, %58 : vector<8x256xf32>
    %60 = arith.mulf %59, %16 : vector<8x256xf32>
    %61 = math.tanh %60 : vector<8x256xf32>
    %62 = arith.mulf %61, %16 : vector<8x256xf32>
    %63 = arith.addf %62, %19 : vector<8x256xf32>
    %64 = vector.extract_strided_slice %63 {offsets = [0, 0], sizes = [8, 64], strides = [1, 1]} : vector<8x256xf32> to vector<8x64xf32>
    %65 = vector.extract_strided_slice %63 {offsets = [0, 64], sizes = [8, 64], strides = [1, 1]} : vector<8x256xf32> to vector<8x64xf32>
    %66 = vector.extract_strided_slice %63 {offsets = [0, 128], sizes = [8, 64], strides = [1, 1]} : vector<8x256xf32> to vector<8x64xf32>
    %67 = vector.extract_strided_slice %63 {offsets = [0, 192], sizes = [8, 64], strides = [1, 1]} : vector<8x256xf32> to vector<8x64xf32>
    %68 = arith.mulf %65, %41 : vector<8x64xf32>
    %69 = arith.mulf %64, %66 : vector<8x64xf32>
    %70 = arith.addf %68, %69 : vector<8x64xf32>
    %71 = math.tanh %70 : vector<8x64xf32>
    %72 = arith.mulf %67, %71 : vector<8x64xf32>
    %73 = vector.extract_strided_slice %72 {offsets = [0, 0], sizes = [8, 32], strides = [1, 1]} : vector<8x64xf32> to vector<8x32xf32>
    %74 = arith.index_cast %51 : i32 to index
    %c0_24 = arith.constant 0 : index
    %75 = vector.load %arg9[%74, %c0_24] : memref<64x32xf32, #tpu.memory_space<vmem>>, vector<8x32xf32>
    tpu.vector_store %arg9[%74, %c0_24], %73 {strides = array<i32>} : memref<64x32xf32, #tpu.memory_space<vmem>>, vector<8x32xf32>,
    %76 = vector.extract_strided_slice %72 {offsets = [0, 32], sizes = [8, 32], strides = [1, 1]} : vector<8x64xf32> to vector<8x32xf32>
    %77 = arith.index_cast %54 : i32 to index
    %c0_25 = arith.constant 0 : index
    %78 = vector.load %arg10[%77, %c0_25] : memref<64x32xf32, #tpu.memory_space<vmem>>, vector<8x32xf32>
    tpu.vector_store %arg10[%77, %c0_25], %76 {strides = array<i32>} : memref<64x32xf32, #tpu.memory_space<vmem>>, vector<8x32xf32>,
    %c2_i32 = arith.constant 2 : i32
    %c8_i32_26 = arith.constant 8 : i32
    %79 = arith.muli %c2_i32, %c8_i32_26 : i32
    %80 = tpu.assume_multiple %79, 8 : i32
    %c7_i32_27 = arith.constant 7 : i32
    %81 = arith.subi %c7_i32_27, %c2_i32 : i32
    %c8_i32_28 = arith.constant 8 : i32
    %82 = arith.muli %81, %c8_i32_28 : i32
    %83 = tpu.assume_multiple %82, 8 : i32
    %84 = arith.index_cast %80 : i32 to index
    %c0_29 = arith.constant 0 : index
    %85 = vector.load %arg8[%84, %c0_29] : memref<64x256xf32, #tpu.memory_space<vmem>>, vector<8x256xf32>
    %86 = arith.truncf %72 : vector<8x64xf32> to vector<8x64xbf16>
    %cst_30 = arith.constant dense<0.000000e+00> : vector<8x256xf32>
    %87 = tpu.matmul %86, %7, %cst_30 {dimension_numbers = #tpu.dot_dimension_numbers<[1], [0], [0], [1], [0, 0, 1, 1], [], []>} : vector<8x64xbf16>, vector<64x256xbf16>, vector<8x256xf32> -> vector<8x256xf32>
    %88 = arith.addf %85, %87 : vector<8x256xf32>
    %89 = arith.mulf %88, %16 : vector<8x256xf32>
    %90 = math.tanh %89 : vector<8x256xf32>
    %91 = arith.mulf %90, %16 : vector<8x256xf32>
    %92 = arith.addf %91, %19 : vector<8x256xf32>
    %93 = vector.extract_strided_slice %92 {offsets = [0, 0], sizes = [8, 64], strides = [1, 1]} : vector<8x256xf32> to vector<8x64xf32>
    %94 = vector.extract_strided_slice %92 {offsets = [0, 64], sizes = [8, 64], strides = [1, 1]} : vector<8x256xf32> to vector<8x64xf32>
    %95 = vector.extract_strided_slice %92 {offsets = [0, 128], sizes = [8, 64], strides = [1, 1]} : vector<8x256xf32> to vector<8x64xf32>
    %96 = vector.extract_strided_slice %92 {offsets = [0, 192], sizes = [8, 64], strides = [1, 1]} : vector<8x256xf32> to vector<8x64xf32>
    %97 = arith.mulf %94, %70 : vector<8x64xf32>
    %98 = arith.mulf %93, %95 : vector<8x64xf32>
    %99 = arith.addf %97, %98 : vector<8x64xf32>
    %100 = math.tanh %99 : vector<8x64xf32>
    %101 = arith.mulf %96, %100 : vector<8x64xf32>
    %102 = vector.extract_strided_slice %101 {offsets = [0, 0], sizes = [8, 32], strides = [1, 1]} : vector<8x64xf32> to vector<8x32xf32>
    %103 = arith.index_cast %80 : i32 to index
    %c0_31 = arith.constant 0 : index
    %104 = vector.load %arg9[%103, %c0_31] : memref<64x32xf32, #tpu.memory_space<vmem>>, vector<8x32xf32>
    tpu.vector_store %arg9[%103, %c0_31], %102 {strides = array<i32>} : memref<64x32xf32, #tpu.memory_space<vmem>>, vector<8x32xf32>,
    %105 = vector.extract_strided_slice %101 {offsets = [0, 32], sizes = [8, 32], strides = [1, 1]} : vector<8x64xf32> to vector<8x32xf32>
    %106 = arith.index_cast %83 : i32 to index
    %c0_32 = arith.constant 0 : index
    %107 = vector.load %arg10[%106, %c0_32] : memref<64x32xf32, #tpu.memory_space<vmem>>, vector<8x32xf32>
    tpu.vector_store %arg10[%106, %c0_32], %105 {strides = array<i32>} : memref<64x32xf32, #tpu.memory_space<vmem>>, vector<8x32xf32>,
    %c3_i32 = arith.constant 3 : i32
    %c8_i32_33 = arith.constant 8 : i32
    %108 = arith.muli %c3_i32, %c8_i32_33 : i32
    %109 = tpu.assume_multiple %108, 8 : i32
    %c7_i32_34 = arith.constant 7 : i32
    %110 = arith.subi %c7_i32_34, %c3_i32 : i32
    %c8_i32_35 = arith.constant 8 : i32
    %111 = arith.muli %110, %c8_i32_35 : i32
    %112 = tpu.assume_multiple %111, 8 : i32
    %113 = arith.index_cast %109 : i32 to index
    %c0_36 = arith.constant 0 : index
    %114 = vector.load %arg8[%113, %c0_36] : memref<64x256xf32, #tpu.memory_space<vmem>>, vector<8x256xf32>
    %115 = arith.truncf %101 : vector<8x64xf32> to vector<8x64xbf16>
    %cst_37 = arith.constant dense<0.000000e+00> : vector<8x256xf32>
    %116 = tpu.matmul %115, %7, %cst_37 {dimension_numbers = #tpu.dot_dimension_numbers<[1], [0], [0], [1], [0, 0, 1, 1], [], []>} : vector<8x64xbf16>, vector<64x256xbf16>, vector<8x256xf32> -> vector<8x256xf32>
    %117 = arith.addf %114, %116 : vector<8x256xf32>
    %118 = arith.mulf %117, %16 : vector<8x256xf32>
    %119 = math.tanh %118 : vector<8x256xf32>
    %120 = arith.mulf %119, %16 : vector<8x256xf32>
    %121 = arith.addf %120, %19 : vector<8x256xf32>
    %122 = vector.extract_strided_slice %121 {offsets = [0, 0], sizes = [8, 64], strides = [1, 1]} : vector<8x256xf32> to vector<8x64xf32>
    %123 = vector.extract_strided_slice %121 {offsets = [0, 64], sizes = [8, 64], strides = [1, 1]} : vector<8x256xf32> to vector<8x64xf32>
    %124 = vector.extract_strided_slice %121 {offsets = [0, 128], sizes = [8, 64], strides = [1, 1]} : vector<8x256xf32> to vector<8x64xf32>
    %125 = vector.extract_strided_slice %121 {offsets = [0, 192], sizes = [8, 64], strides = [1, 1]} : vector<8x256xf32> to vector<8x64xf32>
    %126 = arith.mulf %123, %99 : vector<8x64xf32>
    %127 = arith.mulf %122, %124 : vector<8x64xf32>
    %128 = arith.addf %126, %127 : vector<8x64xf32>
    %129 = math.tanh %128 : vector<8x64xf32>
    %130 = arith.mulf %125, %129 : vector<8x64xf32>
    %131 = vector.extract_strided_slice %130 {offsets = [0, 0], sizes = [8, 32], strides = [1, 1]} : vector<8x64xf32> to vector<8x32xf32>
    %132 = arith.index_cast %109 : i32 to index
    %c0_38 = arith.constant 0 : index
    %133 = vector.load %arg9[%132, %c0_38] : memref<64x32xf32, #tpu.memory_space<vmem>>, vector<8x32xf32>
    tpu.vector_store %arg9[%132, %c0_38], %131 {strides = array<i32>} : memref<64x32xf32, #tpu.memory_space<vmem>>, vector<8x32xf32>,
    %134 = vector.extract_strided_slice %130 {offsets = [0, 32], sizes = [8, 32], strides = [1, 1]} : vector<8x64xf32> to vector<8x32xf32>
    %135 = arith.index_cast %112 : i32 to index
    %c0_39 = arith.constant 0 : index
    %136 = vector.load %arg10[%135, %c0_39] : memref<64x32xf32, #tpu.memory_space<vmem>>, vector<8x32xf32>
    tpu.vector_store %arg10[%135, %c0_39], %134 {strides = array<i32>} : memref<64x32xf32, #tpu.memory_space<vmem>>, vector<8x32xf32>,
    %c4_i32 = arith.constant 4 : i32
    %c8_i32_40 = arith.constant 8 : i32
    %137 = arith.muli %c4_i32, %c8_i32_40 : i32
    %138 = tpu.assume_multiple %137, 8 : i32
    %c7_i32_41 = arith.constant 7 : i32
    %139 = arith.subi %c7_i32_41, %c4_i32 : i32
    %c8_i32_42 = arith.constant 8 : i32
    %140 = arith.muli %139, %c8_i32_42 : i32
    %141 = tpu.assume_multiple %140, 8 : i32
    %142 = arith.index_cast %138 : i32 to index
    %c0_43 = arith.constant 0 : index
    %143 = vector.load %arg8[%142, %c0_43] : memref<64x256xf32, #tpu.memory_space<vmem>>, vector<8x256xf32>
    %144 = arith.truncf %130 : vector<8x64xf32> to vector<8x64xbf16>
    %cst_44 = arith.constant dense<0.000000e+00> : vector<8x256xf32>
    %145 = tpu.matmul %144, %7, %cst_44 {dimension_numbers = #tpu.dot_dimension_numbers<[1], [0], [0], [1], [0, 0, 1, 1], [], []>} : vector<8x64xbf16>, vector<64x256xbf16>, vector<8x256xf32> -> vector<8x256xf32>
    %146 = arith.addf %143, %145 : vector<8x256xf32>
    %147 = arith.mulf %146, %16 : vector<8x256xf32>
    %148 = math.tanh %147 : vector<8x256xf32>
    %149 = arith.mulf %148, %16 : vector<8x256xf32>
    %150 = arith.addf %149, %19 : vector<8x256xf32>
    %151 = vector.extract_strided_slice %150 {offsets = [0, 0], sizes = [8, 64], strides = [1, 1]} : vector<8x256xf32> to vector<8x64xf32>
    %152 = vector.extract_strided_slice %150 {offsets = [0, 64], sizes = [8, 64], strides = [1, 1]} : vector<8x256xf32> to vector<8x64xf32>
    %153 = vector.extract_strided_slice %150 {offsets = [0, 128], sizes = [8, 64], strides = [1, 1]} : vector<8x256xf32> to vector<8x64xf32>
    %154 = vector.extract_strided_slice %150 {offsets = [0, 192], sizes = [8, 64], strides = [1, 1]} : vector<8x256xf32> to vector<8x64xf32>
    %155 = arith.mulf %152, %128 : vector<8x64xf32>
    %156 = arith.mulf %151, %153 : vector<8x64xf32>
    %157 = arith.addf %155, %156 : vector<8x64xf32>
    %158 = math.tanh %157 : vector<8x64xf32>
    %159 = arith.mulf %154, %158 : vector<8x64xf32>
    %160 = vector.extract_strided_slice %159 {offsets = [0, 0], sizes = [8, 32], strides = [1, 1]} : vector<8x64xf32> to vector<8x32xf32>
    %161 = arith.index_cast %138 : i32 to index
    %c0_45 = arith.constant 0 : index
    %162 = vector.load %arg9[%161, %c0_45] : memref<64x32xf32, #tpu.memory_space<vmem>>, vector<8x32xf32>
    tpu.vector_store %arg9[%161, %c0_45], %160 {strides = array<i32>} : memref<64x32xf32, #tpu.memory_space<vmem>>, vector<8x32xf32>,
    %163 = vector.extract_strided_slice %159 {offsets = [0, 32], sizes = [8, 32], strides = [1, 1]} : vector<8x64xf32> to vector<8x32xf32>
    %164 = arith.index_cast %141 : i32 to index
    %c0_46 = arith.constant 0 : index
    %165 = vector.load %arg10[%164, %c0_46] : memref<64x32xf32, #tpu.memory_space<vmem>>, vector<8x32xf32>
    tpu.vector_store %arg10[%164, %c0_46], %163 {strides = array<i32>} : memref<64x32xf32, #tpu.memory_space<vmem>>, vector<8x32xf32>,
    %c5_i32 = arith.constant 5 : i32
    %c8_i32_47 = arith.constant 8 : i32
    %166 = arith.muli %c5_i32, %c8_i32_47 : i32
    %167 = tpu.assume_multiple %166, 8 : i32
    %c7_i32_48 = arith.constant 7 : i32
    %168 = arith.subi %c7_i32_48, %c5_i32 : i32
    %c8_i32_49 = arith.constant 8 : i32
    %169 = arith.muli %168, %c8_i32_49 : i32
    %170 = tpu.assume_multiple %169, 8 : i32
    %171 = arith.index_cast %167 : i32 to index
    %c0_50 = arith.constant 0 : index
    %172 = vector.load %arg8[%171, %c0_50] : memref<64x256xf32, #tpu.memory_space<vmem>>, vector<8x256xf32>
    %173 = arith.truncf %159 : vector<8x64xf32> to vector<8x64xbf16>
    %cst_51 = arith.constant dense<0.000000e+00> : vector<8x256xf32>
    %174 = tpu.matmul %173, %7, %cst_51 {dimension_numbers = #tpu.dot_dimension_numbers<[1], [0], [0], [1], [0, 0, 1, 1], [], []>} : vector<8x64xbf16>, vector<64x256xbf16>, vector<8x256xf32> -> vector<8x256xf32>
    %175 = arith.addf %172, %174 : vector<8x256xf32>
    %176 = arith.mulf %175, %16 : vector<8x256xf32>
    %177 = math.tanh %176 : vector<8x256xf32>
    %178 = arith.mulf %177, %16 : vector<8x256xf32>
    %179 = arith.addf %178, %19 : vector<8x256xf32>
    %180 = vector.extract_strided_slice %179 {offsets = [0, 0], sizes = [8, 64], strides = [1, 1]} : vector<8x256xf32> to vector<8x64xf32>
    %181 = vector.extract_strided_slice %179 {offsets = [0, 64], sizes = [8, 64], strides = [1, 1]} : vector<8x256xf32> to vector<8x64xf32>
    %182 = vector.extract_strided_slice %179 {offsets = [0, 128], sizes = [8, 64], strides = [1, 1]} : vector<8x256xf32> to vector<8x64xf32>
    %183 = vector.extract_strided_slice %179 {offsets = [0, 192], sizes = [8, 64], strides = [1, 1]} : vector<8x256xf32> to vector<8x64xf32>
    %184 = arith.mulf %181, %157 : vector<8x64xf32>
    %185 = arith.mulf %180, %182 : vector<8x64xf32>
    %186 = arith.addf %184, %185 : vector<8x64xf32>
    %187 = math.tanh %186 : vector<8x64xf32>
    %188 = arith.mulf %183, %187 : vector<8x64xf32>
    %189 = vector.extract_strided_slice %188 {offsets = [0, 0], sizes = [8, 32], strides = [1, 1]} : vector<8x64xf32> to vector<8x32xf32>
    %190 = arith.index_cast %167 : i32 to index
    %c0_52 = arith.constant 0 : index
    %191 = vector.load %arg9[%190, %c0_52] : memref<64x32xf32, #tpu.memory_space<vmem>>, vector<8x32xf32>
    tpu.vector_store %arg9[%190, %c0_52], %189 {strides = array<i32>} : memref<64x32xf32, #tpu.memory_space<vmem>>, vector<8x32xf32>,
    %192 = vector.extract_strided_slice %188 {offsets = [0, 32], sizes = [8, 32], strides = [1, 1]} : vector<8x64xf32> to vector<8x32xf32>
    %193 = arith.index_cast %170 : i32 to index
    %c0_53 = arith.constant 0 : index
    %194 = vector.load %arg10[%193, %c0_53] : memref<64x32xf32, #tpu.memory_space<vmem>>, vector<8x32xf32>
    tpu.vector_store %arg10[%193, %c0_53], %192 {strides = array<i32>} : memref<64x32xf32, #tpu.memory_space<vmem>>, vector<8x32xf32>,
    %c6_i32 = arith.constant 6 : i32
    %c8_i32_54 = arith.constant 8 : i32
    %195 = arith.muli %c6_i32, %c8_i32_54 : i32
    %196 = tpu.assume_multiple %195, 8 : i32
    %c7_i32_55 = arith.constant 7 : i32
    %197 = arith.subi %c7_i32_55, %c6_i32 : i32
    %c8_i32_56 = arith.constant 8 : i32
    %198 = arith.muli %197, %c8_i32_56 : i32
    %199 = tpu.assume_multiple %198, 8 : i32
    %200 = arith.index_cast %196 : i32 to index
    %c0_57 = arith.constant 0 : index
    %201 = vector.load %arg8[%200, %c0_57] : memref<64x256xf32, #tpu.memory_space<vmem>>, vector<8x256xf32>
    %202 = arith.truncf %188 : vector<8x64xf32> to vector<8x64xbf16>
    %cst_58 = arith.constant dense<0.000000e+00> : vector<8x256xf32>
    %203 = tpu.matmul %202, %7, %cst_58 {dimension_numbers = #tpu.dot_dimension_numbers<[1], [0], [0], [1], [0, 0, 1, 1], [], []>} : vector<8x64xbf16>, vector<64x256xbf16>, vector<8x256xf32> -> vector<8x256xf32>
    %204 = arith.addf %201, %203 : vector<8x256xf32>
    %205 = arith.mulf %204, %16 : vector<8x256xf32>
    %206 = math.tanh %205 : vector<8x256xf32>
    %207 = arith.mulf %206, %16 : vector<8x256xf32>
    %208 = arith.addf %207, %19 : vector<8x256xf32>
    %209 = vector.extract_strided_slice %208 {offsets = [0, 0], sizes = [8, 64], strides = [1, 1]} : vector<8x256xf32> to vector<8x64xf32>
    %210 = vector.extract_strided_slice %208 {offsets = [0, 64], sizes = [8, 64], strides = [1, 1]} : vector<8x256xf32> to vector<8x64xf32>
    %211 = vector.extract_strided_slice %208 {offsets = [0, 128], sizes = [8, 64], strides = [1, 1]} : vector<8x256xf32> to vector<8x64xf32>
    %212 = vector.extract_strided_slice %208 {offsets = [0, 192], sizes = [8, 64], strides = [1, 1]} : vector<8x256xf32> to vector<8x64xf32>
    %213 = arith.mulf %210, %186 : vector<8x64xf32>
    %214 = arith.mulf %209, %211 : vector<8x64xf32>
    %215 = arith.addf %213, %214 : vector<8x64xf32>
    %216 = math.tanh %215 : vector<8x64xf32>
    %217 = arith.mulf %212, %216 : vector<8x64xf32>
    %218 = vector.extract_strided_slice %217 {offsets = [0, 0], sizes = [8, 32], strides = [1, 1]} : vector<8x64xf32> to vector<8x32xf32>
    %219 = arith.index_cast %196 : i32 to index
    %c0_59 = arith.constant 0 : index
    %220 = vector.load %arg9[%219, %c0_59] : memref<64x32xf32, #tpu.memory_space<vmem>>, vector<8x32xf32>
    tpu.vector_store %arg9[%219, %c0_59], %218 {strides = array<i32>} : memref<64x32xf32, #tpu.memory_space<vmem>>, vector<8x32xf32>,
    %221 = vector.extract_strided_slice %217 {offsets = [0, 32], sizes = [8, 32], strides = [1, 1]} : vector<8x64xf32> to vector<8x32xf32>
    %222 = arith.index_cast %199 : i32 to index
    %c0_60 = arith.constant 0 : index
    %223 = vector.load %arg10[%222, %c0_60] : memref<64x32xf32, #tpu.memory_space<vmem>>, vector<8x32xf32>
    tpu.vector_store %arg10[%222, %c0_60], %221 {strides = array<i32>} : memref<64x32xf32, #tpu.memory_space<vmem>>, vector<8x32xf32>,
    %c7_i32_61 = arith.constant 7 : i32
    %c8_i32_62 = arith.constant 8 : i32
    %224 = arith.muli %c7_i32_61, %c8_i32_62 : i32
    %225 = tpu.assume_multiple %224, 8 : i32
    %c7_i32_63 = arith.constant 7 : i32
    %226 = arith.subi %c7_i32_63, %c7_i32_61 : i32
    %c8_i32_64 = arith.constant 8 : i32
    %227 = arith.muli %226, %c8_i32_64 : i32
    %228 = tpu.assume_multiple %227, 8 : i32
    %229 = arith.index_cast %225 : i32 to index
    %c0_65 = arith.constant 0 : index
    %230 = vector.load %arg8[%229, %c0_65] : memref<64x256xf32, #tpu.memory_space<vmem>>, vector<8x256xf32>
    %231 = arith.truncf %217 : vector<8x64xf32> to vector<8x64xbf16>
    %cst_66 = arith.constant dense<0.000000e+00> : vector<8x256xf32>
    %232 = tpu.matmul %231, %7, %cst_66 {dimension_numbers = #tpu.dot_dimension_numbers<[1], [0], [0], [1], [0, 0, 1, 1], [], []>} : vector<8x64xbf16>, vector<64x256xbf16>, vector<8x256xf32> -> vector<8x256xf32>
    %233 = arith.addf %230, %232 : vector<8x256xf32>
    %234 = arith.mulf %233, %16 : vector<8x256xf32>
    %235 = math.tanh %234 : vector<8x256xf32>
    %236 = arith.mulf %235, %16 : vector<8x256xf32>
    %237 = arith.addf %236, %19 : vector<8x256xf32>
    %238 = vector.extract_strided_slice %237 {offsets = [0, 0], sizes = [8, 64], strides = [1, 1]} : vector<8x256xf32> to vector<8x64xf32>
    %239 = vector.extract_strided_slice %237 {offsets = [0, 64], sizes = [8, 64], strides = [1, 1]} : vector<8x256xf32> to vector<8x64xf32>
    %240 = vector.extract_strided_slice %237 {offsets = [0, 128], sizes = [8, 64], strides = [1, 1]} : vector<8x256xf32> to vector<8x64xf32>
    %241 = vector.extract_strided_slice %237 {offsets = [0, 192], sizes = [8, 64], strides = [1, 1]} : vector<8x256xf32> to vector<8x64xf32>
    %242 = arith.mulf %239, %215 : vector<8x64xf32>
    %243 = arith.mulf %238, %240 : vector<8x64xf32>
    %244 = arith.addf %242, %243 : vector<8x64xf32>
    %245 = math.tanh %244 : vector<8x64xf32>
    %246 = arith.mulf %241, %245 : vector<8x64xf32>
    %247 = vector.extract_strided_slice %246 {offsets = [0, 0], sizes = [8, 32], strides = [1, 1]} : vector<8x64xf32> to vector<8x32xf32>
    %248 = arith.index_cast %225 : i32 to index
    %c0_67 = arith.constant 0 : index
    %249 = vector.load %arg9[%248, %c0_67] : memref<64x32xf32, #tpu.memory_space<vmem>>, vector<8x32xf32>
    tpu.vector_store %arg9[%248, %c0_67], %247 {strides = array<i32>} : memref<64x32xf32, #tpu.memory_space<vmem>>, vector<8x32xf32>,
    %250 = vector.extract_strided_slice %246 {offsets = [0, 32], sizes = [8, 32], strides = [1, 1]} : vector<8x64xf32> to vector<8x32xf32>
    %251 = arith.index_cast %228 : i32 to index
    %c0_68 = arith.constant 0 : index
    %252 = vector.load %arg10[%251, %c0_68] : memref<64x32xf32, #tpu.memory_space<vmem>>, vector<8x32xf32>
    tpu.vector_store %arg10[%251, %c0_68], %250 {strides = array<i32>} : memref<64x32xf32, #tpu.memory_space<vmem>>, vector<8x32xf32>,
    %c8_i32_69 = arith.constant 8 : i32
    %c0_70 = arith.constant 0 : index
    %c0_71 = arith.constant 0 : index
    %253 = vector.load %arg9[%c0_70, %c0_71] : memref<64x32xf32, #tpu.memory_space<vmem>>, vector<64x32xf32>
    %254 = arith.truncf %253 : vector<64x32xf32> to vector<64x32xbf16>
    %c0_72 = arith.constant 0 : index
    %c0_73 = arith.constant 0 : index
    %255 = vector.load %arg4[%c0_72, %c0_73] : memref<32x16xbf16, #tpu.memory_space<vmem>>, vector<32x16xbf16>
    %cst_74 = arith.constant dense<0.000000e+00> : vector<64x16xf32>
    %256 = tpu.matmul %254, %255, %cst_74 {dimension_numbers = #tpu.dot_dimension_numbers<[1], [0], [0], [1], [0, 0, 1, 1], [], []>} : vector<64x32xbf16>, vector<32x16xbf16>, vector<64x16xf32> -> vector<64x16xf32>
    %c0_75 = arith.constant 0 : index
    %c0_76 = arith.constant 0 : index
    %257 = vector.load %arg10[%c0_75, %c0_76] : memref<64x32xf32, #tpu.memory_space<vmem>>, vector<64x32xf32>
    %258 = arith.truncf %257 : vector<64x32xf32> to vector<64x32xbf16>
    %c0_77 = arith.constant 0 : index
    %c0_78 = arith.constant 0 : index
    %259 = vector.load %arg5[%c0_77, %c0_78] : memref<32x16xbf16, #tpu.memory_space<vmem>>, vector<32x16xbf16>
    %cst_79 = arith.constant dense<0.000000e+00> : vector<64x16xf32>
    %260 = tpu.matmul %258, %259, %cst_79 {dimension_numbers = #tpu.dot_dimension_numbers<[1], [0], [0], [1], [0, 0, 1, 1], [], []>} : vector<64x32xbf16>, vector<32x16xbf16>, vector<64x16xf32> -> vector<64x16xf32>
    %261 = arith.addf %256, %260 : vector<64x16xf32>
    %c0_80 = arith.constant 0 : index
    %c0_81 = arith.constant 0 : index
    %262 = vector.load %arg6[%c0_80, %c0_81] : memref<1x16xf32, #tpu.memory_space<vmem>>, vector<1x16xf32>
    %263 = vector.broadcast %262 : vector<1x16xf32> to vector<64x16xf32>
    %264 = arith.addf %261, %263 : vector<64x16xf32>
    %c0_82 = arith.constant 0 : index
    %c0_83 = arith.constant 0 : index
    %265 = vector.load %arg7[%c0_82, %c0_83] : memref<64x16xf32, #tpu.memory_space<vmem>>, vector<64x16xf32>
    tpu.vector_store %arg7[%c0_82, %c0_83], %264 {strides = array<i32>} : memref<64x16xf32, #tpu.memory_space<vmem>>, vector<64x16xf32>,
    return
  }
}

</mosaic_0001>

<bundles_post_ra>
// kernel: tpu_custom_call.1
= control target key start
LH: loop header
LB: loop body
LE: loop exit
PB: predicated region body
PF: predicated region fallthrough
CT: control target
= control target key end

     0   :  { %v1324_v1 = vmov 0   ;;  %vm91_vm0 = vcmask 261120   ;;  %v41_v16 = vlaneseq  ;;  %v1325_v41 = vmov 0.5   ;;  %s1733_s1 = inlined_call_operand.vmem [shape: bf16[32,256], index: 1, kind: input, shape index: {}]   ;;  %s1734_s0 = inlined_call_operand.vmem [shape: bf16[64,32], index: 0, kind: input, shape index: {}]   ;;  %s1735_s2 = inlined_call_operand.vmem [shape: bf16[64,256], index: 2, kind: input, shape index: {}]   ;;  %s1736_s3 = inlined_call_operand.vmem [shape: f32[1,256], index: 3, kind: input, shape index: {}]   ;;  %s1737_s5 = inlined_call_operand.vmem [shape: bf16[32,16], index: 5, kind: input, shape index: {}]   ;;  %s1738_s4 = inlined_call_operand.vmem [shape: bf16[32,16], index: 4, kind: input, shape index: {}]   ;;  %s1739_s6 = inlined_call_operand.vmem [shape: f32[1,16], index: 6, kind: input, shape index: {}]   ;;  %s1740_s7 = inlined_call_operand.vmem [shape: f32[64,16], index: 7, kind: output, shape index: {}]  }
   0x1   :  { %v1250_v0 = vld [vmem:[%s1733_s1 + $0x4] ss:$8 sps:$4 sm:$0xff]   ;;  %156 = vmatprep.mubr.bf16.mxu1 %v1324_v1  ;;  %136 = vmatprep.mubr.bf16.mxu0 %v1324_v1  ;;  %v1252_v2 = vld [vmem:[%s1733_s1] ss:$8 sps:$4 sm:$0xff]   ;;  %v1253_v3 = vld [vmem:[%s1733_s1 + $0x14] ss:$8 sps:$4 sm:$0xff]  }
   0x2   :  { %1234 = vmatprep.subr.bf16.mxu1 %v1250_v0  ;;  %104 = vmatprep.subr.bf16.mxu0 %v1250_v0  ;;  %v1255_v4 = vld [vmem:[%s1733_s1 + $0x10] ss:$8 sps:$4 sm:$0xff]   ;;  %v1385_v5 = vld [vmem:[%s1735_s2 + $0x4] ss:$8 sps:$4 sm:$0xff]   ;;  %v1393_v7 = vld [vmem:[%s1735_s2] ss:$8 sps:$4 sm:$0xff]  }
   0x3   :  { %1236 = vmatpush1.bf16.msra.mxu1 %v1252_v2  ;;  %105 = vmatpush1.bf16.msra.mxu0 %v1252_v2  ;;  %v1256_v6 = vld [vmem:[%s1734_s0 + $0x10] sm:$0xff]   ;;  %v1267_v9 = vld [vmem:[%s1734_s0] sm:$0xff]   ;;  %v1263_v12 = vld [vmem:[%s1734_s0 + $0x18] sm:$0xff]   ;;  %v42_v21 = vshrl.u32 %v41_v16, 7  ;;  %v202_v26 = vand.u32 127, %v41_v16  ;;  %vm259_vm2 = vcmask 523264  }
   0x4   :  { %1235 = vmatprep.subr.bf16.mxu1 %v1253_v3  ;;  %106 = vmatprep.subr.bf16.mxu0 %v1253_v3  ;;  %v1399_v8 = vld [vmem:[%s1735_s2 + $0x14] ss:$8 sps:$4 sm:$0xff]   ;;  %v1410_v10 = vld [vmem:[%s1735_s2 + $0x10] ss:$8 sps:$4 sm:$0xff]   ;;  %v1417_v11 = vld [vmem:[%s1735_s2 + $0x24] ss:$8 sps:$4 sm:$0xff]  }
   0x5   :  { %v1430_v13 = vld [vmem:[%s1735_s2 + $0x20] ss:$8 sps:$4 sm:$0xff]   ;;  %v1436_v14 = vld [vmem:[%s1735_s2 + $0x34] ss:$8 sps:$4 sm:$0xff]   ;;  %v1445_v15 = vld [vmem:[%s1735_s2 + $0x30] ss:$8 sps:$4 sm:$0xff]  }
   0x6   :  { %v43_v27 = vsub.s32 0, %v42_v21  ;;  %v39_v28 = vld [vmem:[%s1736_s3] sm:$0x3]  ;;  %v47_v29 = vsub.s32 1, %v42_v21  ;;  %v203_v33 = vadd.s32 128, %v202_v26  ;;  %s1326_s3 = smov 64  }
   0x7   :  { %1237 = vmatpush1.bf16.msra.mxu1 %v1255_v4  ;;  %107 = vmatpush1.bf16.msra.mxu0 %v1255_v4  ;;  %vm1138_vm3 = vcmask 130048  }
   0x8   :  { %263 = vmatprep.subr.bf16.mxu1 %v1385_v5  ;;  %428 = vmatprep.subr.bf16.mxu0 %v1385_v5  ;;  %v1482_v34 = vrot.slane %v39_v28, %v43_v27  ;;  %v1486_v36 = vrot.slane %v39_v28, %v47_v29  ;;  %vm207_vm1 = vcmp.lt.s32.totalorder %v203_v33, 192  ;;  %v1271_v33 = vld [vmem:[%s1734_s0 + $0x8] sm:$0xff]   ;;  %s1327_s0 = smov 32  }
   0x9   :  { %v1490_v42 = vsel %vm207_vm1, 1.0, %v1325_v41  ;;  %v1493_v51 = vsel %vm207_vm1, 0.0, %v1325_v41 }
   0xa   :  { %1168 = vmatmul.mubr.msk.bf16.vlgmr.msra.gmra.mrb[0].mxu1 %vm91_vm0, %v1256_v6  ;;  %1166 = vmatmul.mubr.msk.bf16.vlgmr.msra.gmra.mrb[0].mxu0 %vm91_vm0, %v1267_v9 }
   0xb   :  { %264 = vmatpush1.bf16.msra.mxu1 %v1393_v7  ;;  %166 = vmatprep.mubr.bf16.mxu1 %v1324_v1 }
   0xc   :  { %265 = vmatprep.subr.bf16.mxu1 %v1399_v8  ;;  %429 = vmatpush1.bf16.msra.mxu0 %v1393_v7 }
   0xd   :  { %146 = vmatprep.mubr.bf16.mxu0 %v1324_v1  ;;  %430 = vmatprep.subr.bf16.mxu0 %v1399_v8 }
   0xf   :  { %266 = vmatpush1.bf16.msra.mxu1 %v1410_v10 }
  0x10   :  { %267 = vmatprep.subr.bf16.mxu1 %v1417_v11  ;;  %431 = vmatpush1.bf16.msra.mxu0 %v1410_v10 }
  0x11   :  { %432 = vmatprep.subr.bf16.mxu0 %v1417_v11 }
  0x12   :  { %1169 = vmatmul.mubr.msk.bf16.gmra.mrb[4].mxu1 %vm91_vm0, %v1263_v12  ;;  %1167 = vmatmul.mubr.msk.bf16.gmra.mrb[4].mxu0 %vm91_vm0, %v1271_v33 }
  0x13   :  { %268 = vmatpush1.bf16.msra.mxu1 %v1430_v13  ;;  %295 = vmatprep.mubr.bf16.mxu1 %v1324_v1 }
  0x14   :  { %269 = vmatprep.subr.bf16.mxu1 %v1436_v14  ;;  %433 = vmatpush1.bf16.msra.mxu0 %v1430_v13 }
  0x15   :  { %434 = vmatprep.subr.bf16.mxu0 %v1436_v14  ;;  %460 = vmatprep.mubr.bf16.mxu0 %v1324_v1 }
  0x17   :  { %270 = vmatpush1.bf16.msra.mxu1 %v1445_v15 }
  0x18   :  { %345 = vmatprep.subr.bf16.mxu1 %v1385_v5  ;;  %435 = vmatpush1.bf16.msra.mxu0 %v1445_v15 }
  0x19   :  { %594 = vmatprep.subr.bf16.mxu0 %v1385_v5 }
  0x1a   :  { %296 = vmatmul.mubr.bf16.vlgmr.msra.gmra.mrb[8].mxu1 %v1324_v1 }
  0x1b   :  { %346 = vmatpush1.bf16.msra.mxu1 %v1393_v7  ;;  %377 = vmatprep.mubr.bf16.mxu1 %v1324_v1 }
  0x1c   :  { %347 = vmatprep.subr.bf16.mxu1 %v1399_v8 }
  0x1f   :  { %348 = vmatpush1.bf16.msra.mxu1 %v1410_v10 }
  0x20   :  { %349 = vmatprep.subr.bf16.mxu1 %v1417_v11 }
  0x23   :  { %350 = vmatpush1.bf16.msra.mxu1 %v1430_v13 }
  0x24   :  { %351 = vmatprep.subr.bf16.mxu1 %v1436_v14 }
  0x27   :  { %352 = vmatpush1.bf16.msra.mxu1 %v1445_v15 }
  0x28   :  { %511 = vmatprep.subr.bf16.mxu1 %v1385_v5 }
  0xdd   :  { %v1465_v17 = vpop.f32.mrb[0].mxu1  ;;  %v138_v20 = vpop.f32.mrb[0].mxu0 }
  0xde   :  { %v1467_v18 = vpop.f32.mrb[1].mxu1  ;;  %v140_v23 = vpop.f32.mrb[1].mxu0  ;;  %v139_v37 = vadd.f32 %v138_v20, %v1482_v34 }
  0xdf   :  { %v1469_v19 = vpop.f32.mrb[2].mxu1  ;;  %v142_v24 = vpop.f32.mrb[2].mxu0  ;;  %v141_v38 = vadd.f32 %v140_v23, %v1486_v36 }
  0xe0   :  { %v1471_v22 = vpop.f32.mrb[3].mxu1  ;;  %v144_v25 = vpop.f32.mrb[3].mxu0  ;;  %v143_v0 = vadd.f32 %v142_v24, %v1482_v34 }
  0xe1   :  { %v145_v2 = vadd.f32 %v144_v25, %v1486_v36 }
  0xe5   :  { %v1476_v30 = vpop.f32.mrb[4].mxu1 }
  0xe6   :  { %v1478_v31 = vpop.f32.mrb[5].mxu1 }
  0xe7   :  { %v1480_v32 = vpop.f32.mrb[6].mxu1 }
  0xe8   :  { %v1484_v35 = vpop.f32.mrb[7].mxu1 }
  0xed   :  { %v297_v39 = vpop.f32.mrb[8].mxu1 }
  0xee   :  { %v304_v40 = vadd.f32 %v297_v39, %v139_v37  ;;  %v299_v43 = vpop.f32.mrb[9].mxu1 }
  0xef   :  { %v305_v44 = vadd.f32 %v299_v43, %v141_v38  ;;  %v301_v45 = vpop.f32.mrb[10].mxu1 }
  0xf0   :  { %v306_v46 = vmul.f32 0.5, %v304_v40  ;;  %v302_v47 = vpop.f32.mrb[11].mxu1 }
  0xf1   :  { %v307_v48 = vmul.f32 %v305_v44, %v1490_v42  ;;  %v148_v44 = vpop.f32.mrb[4].mxu0 }
  0xf2   :  { %1276 = vtanh.f32 %v306_v46  ;;  %v150_v45 = vpop.f32.mrb[5].mxu0 }
  0xf3   :  { %1278 = vtanh.f32 %v307_v48  ;;  %v152_v46 = vpop.f32.mrb[6].mxu0 }
  0xf4   :  { %v154_v47 = vpop.f32.mrb[7].mxu0 }
  0xfc   :  { %v1277_v49 = vpop.eup %1276 }
  0xfd   :  { %v1279_v50 = vpop.eup %1278  ;;  %v310_v52 = vmul.f32 0.5, %v1277_v49  ;;  %v149_v49 = vadd.f32 %v148_v44, %v1482_v34 }
  0xfe   :  { %v311_v53 = vmul.f32 %v1279_v50, %v1490_v42  ;;  %v151_v50 = vadd.f32 %v150_v45, %v1486_v36 }
  0xff   :  { %v312_v54 = vadd.f32 0.5, %v310_v52 }
 0x100   :  { %v313_v55 = vadd.f32 %v311_v53, %v1493_v51 }
 0x101   :  { %v314_v57 = vmul.f32 0.0, %v312_v54 }
 0x102   :  { %v315_v56 = vmul.f32 %v313_v55, %v312_v54 }
 0x104   :  { %317 = vrot.lane.b32.xlu0 %v315_v56, %s1326_s3 }
 0x176   :  { %v318_v58 = vpop.permute.xlu0 %317 }
 0x177   :  { %v320_v59 = vadd.f32 %v318_v58, %v314_v57 }
 0x179   :  { %1280 = vtanh.f32 %v320_v59 }
 0x183   :  { %v1281_v60 = vpop.eup %1280 }
 0x184   :  { %v1498_v61 = vmul.f32 %v1281_v60, %v313_v55 }
 0x186   :  { %v338_v62 = vpack.c.bf16 %v1498_v61, %v1498_v61 }
 0x188   :  { %340 = vrot.lane.b32.xlu0 %v338_v62, %s1326_s3 }
 0x1fa   :  { %v341_v63 = vpop.permute.xlu0 %340 }
 0x1fb   :  { %1178 = vmatmul.mubr.msk.bf16.vlgmr.msra.gmra.mrb[12].mxu1 %vm259_vm2, %v341_v63 }
 0x1fc   :  { %512 = vmatpush1.bf16.msra.mxu1 %v1393_v7  ;;  %543 = vmatprep.mubr.bf16.mxu1 %v1324_v1 }
 0x1fd   :  { %513 = vmatprep.subr.bf16.mxu1 %v1399_v8 }
 0x200   :  { %514 = vmatpush1.bf16.msra.mxu1 %v1410_v10 }
 0x201   :  { %515 = vmatprep.subr.bf16.mxu1 %v1417_v11 }
 0x204   :  { %516 = vmatpush1.bf16.msra.mxu1 %v1430_v13 }
 0x205   :  { %517 = vmatprep.subr.bf16.mxu1 %v1436_v14 }
 0x208   :  { %518 = vmatpush1.bf16.msra.mxu1 %v1445_v15 }
 0x209   :  { %677 = vmatprep.subr.bf16.mxu1 %v1385_v5 }
 0x2ce   :  { %v379_v3 = vpop.f32.mrb[12].mxu1 }
 0x2cf   :  { %v386_v4 = vadd.f32 %v379_v3, %v143_v0  ;;  %v381_v6 = vpop.f32.mrb[13].mxu1 }
 0x2d0   :  { %v387_v9 = vadd.f32 %v381_v6, %v145_v2  ;;  %v383_v12 = vpop.f32.mrb[14].mxu1 }
 0x2d1   :  { %v388_v16 = vmul.f32 0.5, %v386_v4  ;;  %v384_v20 = vpop.f32.mrb[15].mxu1 }
 0x2d2   :  { %v389_v21 = vmul.f32 %v387_v9, %v1490_v42 }
 0x2d3   :  { %1282 = vtanh.f32 %v388_v16 }
 0x2d4   :  { %1284 = vtanh.f32 %v389_v21 }
 0x2dd   :  { %v1283_v23 = vpop.eup %1282 }
 0x2de   :  { %v1285_v26 = vpop.eup %1284  ;;  %v392_v27 = vmul.f32 0.5, %v1283_v23 }
 0x2df   :  { %v393_v28 = vmul.f32 %v1285_v26, %v1490_v42  ;;  %v153_v26 = vadd.f32 %v152_v46, %v1482_v34 }
 0x2e0   :  { %v394_v29 = vadd.f32 0.5, %v392_v27  ;;  %v155_v27 = vadd.f32 %v154_v47, %v1486_v36 }
 0x2e1   :  { %v395_v24 = vadd.f32 %v393_v28, %v1493_v51 }
 0x2e2   :  { %v396_v37 = vmul.f32 %v394_v29, %v320_v59 }
 0x2e3   :  { %v397_v25 = vmul.f32 %v395_v24, %v394_v29 }
 0x2e5   :  { %399 = vrot.lane.b32.xlu1 %v397_v25, %s1326_s3 }
 0x357   :  { %v400_v38 = vpop.permute.xlu1 %399 }
 0x358   :  { %v402_v39 = vadd.f32 %v400_v38, %v396_v37 }
 0x35a   :  { %1286 = vtanh.f32 %v402_v39 }
 0x364   :  { %v1287_v40 = vpop.eup %1286 }
 0x365   :  { %v1524_v41 = vmul.f32 %v1287_v40, %v395_v24 }
 0x367   :  { %v421_v43 = vpack.c.bf16 %v1524_v41, %v1524_v41 }
 0x369   :  { %423 = vrot.lane.b32.xlu1 %v421_v43, %s1326_s3 }
 0x3db   :  { %v424_v48 = vpop.permute.xlu1 %423 }
 0x3dc   :  { %1179 = vmatmul.mubr.msk.bf16.vlgmr.msra.gmra.mrb[8].mxu0 %vm259_vm2, %v424_v48 }
 0x3dd   :  { %595 = vmatpush1.bf16.msra.mxu0 %v1393_v7  ;;  %626 = vmatprep.mubr.bf16.mxu0 %v1324_v1 }
 0x3de   :  { %596 = vmatprep.subr.bf16.mxu0 %v1399_v8 }
 0x3e1   :  { %597 = vmatpush1.bf16.msra.mxu0 %v1410_v10 }
 0x3e2   :  { %598 = vmatprep.subr.bf16.mxu0 %v1417_v11 }
 0x3e5   :  { %599 = vmatpush1.bf16.msra.mxu0 %v1430_v13 }
 0x3e6   :  { %600 = vmatprep.subr.bf16.mxu0 %v1436_v14 }
 0x3e9   :  { %601 = vmatpush1.bf16.msra.mxu0 %v1445_v15 }
 0x3ea   :  { %760 = vmatprep.subr.bf16.mxu0 %v1385_v5 }
 0x4af   :  { %v462_v52 = vpop.f32.mrb[8].mxu0 }
 0x4b0   :  { %v469_v53 = vadd.f32 %v462_v52, %v149_v49  ;;  %v464_v54 = vpop.f32.mrb[9].mxu0 }
 0x4b1   :  { %v470_v55 = vadd.f32 %v464_v54, %v151_v50  ;;  %v466_v56 = vpop.f32.mrb[10].mxu0 }
 0x4b2   :  { %v471_v57 = vmul.f32 0.5, %v469_v53  ;;  %v467_v58 = vpop.f32.mrb[11].mxu0  ;;  %v159_v56 = vadd.f32 %v1465_v17, %v1482_v34 }
 0x4b3   :  { %v472_v59 = vmul.f32 %v470_v55, %v1490_v42 }
 0x4b4   :  { %1288 = vtanh.f32 %v471_v57  ;;  %v161_v57 = vadd.f32 %v1467_v18, %v1486_v36 }
 0x4b5   :  { %1290 = vtanh.f32 %v472_v59 }
 0x4be   :  { %v1289_v60 = vpop.eup %1288 }
 0x4bf   :  { %v1291_v62 = vpop.eup %1290  ;;  %v475_v63 = vmul.f32 0.5, %v1289_v60 }
 0x4c0   :  { %v476_v0 = vmul.f32 %v1291_v62, %v1490_v42 }
 0x4c1   :  { %v477_v2 = vadd.f32 0.5, %v475_v63 }
 0x4c2   :  { %v478_v3 = vadd.f32 %v476_v0, %v1493_v51 }
 0x4c3   :  { %v479_v6 = vmul.f32 %v477_v2, %v402_v39 }
 0x4c4   :  { %v480_v4 = vmul.f32 %v478_v3, %v477_v2 }
 0x4c6   :  { %482 = vrot.lane.b32.xlu0 %v480_v4, %s1326_s3 }
 0x538   :  { %v483_v9 = vpop.permute.xlu0 %482 }
 0x539   :  { %v485_v12 = vadd.f32 %v483_v9, %v479_v6 }
 0x53b   :  { %1292 = vtanh.f32 %v485_v12 }
 0x545   :  { %v1293_v16 = vpop.eup %1292 }
 0x546   :  { %v1545_v20 = vmul.f32 %v1293_v16, %v478_v3 }
 0x548   :  { %v504_v21 = vpack.c.bf16 %v1545_v20, %v1545_v20 }
 0x54a   :  { %506 = vrot.lane.b32.xlu1 %v504_v21, %s1326_s3 }
 0x5bc   :  { %v507_v23 = vpop.permute.xlu1 %506 }
 0x5bd   :  { %1180 = vmatmul.mubr.msk.bf16.vlgmr.msra.gmra.mrb[16].mxu1 %vm259_vm2, %v507_v23 }
 0x5be   :  { %678 = vmatpush1.bf16.msra.mxu1 %v1393_v7  ;;  %709 = vmatprep.mubr.bf16.mxu1 %v1324_v1 }
 0x5bf   :  { %679 = vmatprep.subr.bf16.mxu1 %v1399_v8 }
 0x5c2   :  { %680 = vmatpush1.bf16.msra.mxu1 %v1410_v10 }
 0x5c3   :  { %681 = vmatprep.subr.bf16.mxu1 %v1417_v11 }
 0x5c6   :  { %682 = vmatpush1.bf16.msra.mxu1 %v1430_v13 }
 0x5c7   :  { %683 = vmatprep.subr.bf16.mxu1 %v1436_v14 }
 0x5ca   :  { %684 = vmatpush1.bf16.msra.mxu1 %v1445_v15 }
 0x5cb   :  { %843 = vmatprep.subr.bf16.mxu1 %v1385_v5 }
 0x690   :  { %v545_v28 = vpop.f32.mrb[16].mxu1 }
 0x691   :  { %v552_v29 = vadd.f32 %v545_v28, %v153_v26  ;;  %v547_v24 = vpop.f32.mrb[17].mxu1 }
 0x692   :  { %v553_v25 = vadd.f32 %v547_v24, %v155_v27  ;;  %v549_v33 = vpop.f32.mrb[18].mxu1 }
 0x693   :  { %v554_v37 = vmul.f32 0.5, %v552_v29  ;;  %v550_v38 = vpop.f32.mrb[19].mxu1 }
 0x694   :  { %v555_v39 = vmul.f32 %v553_v25, %v1490_v42  ;;  %v163_v25 = vadd.f32 %v1469_v19, %v1482_v34 }
 0x695   :  { %1294 = vtanh.f32 %v554_v37 }
 0x696   :  { %1296 = vtanh.f32 %v555_v39 }
 0x69f   :  { %v1295_v40 = vpop.eup %1294 }
 0x6a0   :  { %v1297_v43 = vpop.eup %1296  ;;  %v558_v44 = vmul.f32 0.5, %v1295_v40 }
 0x6a1   :  { %v559_v5 = vmul.f32 %v1297_v43, %v1490_v42 }
 0x6a2   :  { %v560_v45 = vadd.f32 0.5, %v558_v44 }
 0x6a3   :  { %v561_v46 = vadd.f32 %v559_v5, %v1493_v51 }
 0x6a4   :  { %v562_v48 = vmul.f32 %v560_v45, %v485_v12 }
 0x6a5   :  { %v563_v47 = vmul.f32 %v561_v46, %v560_v45 }
 0x6a7   :  { %565 = vrot.lane.b32.xlu0 %v563_v47, %s1326_s3 }
 0x719   :  { %v566_v49 = vpop.permute.xlu0 %565 }
 0x71a   :  { %v568_v50 = vadd.f32 %v566_v49, %v562_v48 }
 0x71c   :  { %1298 = vtanh.f32 %v568_v50 }
 0x726   :  { %v1299_v52 = vpop.eup %1298 }
 0x727   :  { %v1566_v53 = vmul.f32 %v1299_v52, %v561_v46  ;;  %v171_v52 = vadd.f32 %v1478_v31, %v1486_v36 }
 0x729   :  { %v587_v54 = vpack.c.bf16 %v1566_v53, %v1566_v53 }
 0x72b   :  { %589 = vrot.lane.b32.xlu1 %v587_v54, %s1326_s3 }
 0x79d   :  { %v590_v55 = vpop.permute.xlu1 %589 }
 0x79e   :  { %1181 = vmatmul.mubr.msk.bf16.vlgmr.msra.gmra.mrb[12].mxu0 %vm259_vm2, %v590_v55 }
 0x79f   :  { %761 = vmatpush1.bf16.msra.mxu0 %v1393_v7  ;;  %792 = vmatprep.mubr.bf16.mxu0 %v1324_v1 }
 0x7a0   :  { %762 = vmatprep.subr.bf16.mxu0 %v1399_v8 }
 0x7a3   :  { %763 = vmatpush1.bf16.msra.mxu0 %v1410_v10 }
 0x7a4   :  { %764 = vmatprep.subr.bf16.mxu0 %v1417_v11 }
 0x7a7   :  { %765 = vmatpush1.bf16.msra.mxu0 %v1430_v13 }
 0x7a8   :  { %766 = vmatprep.subr.bf16.mxu0 %v1436_v14 }
 0x7ab   :  { %767 = vmatpush1.bf16.msra.mxu0 %v1445_v15 }
 0x871   :  { %v628_v58 = vpop.f32.mrb[12].mxu0 }
 0x872   :  { %v635_v59 = vadd.f32 %v628_v58, %v159_v56  ;;  %v630_v60 = vpop.f32.mrb[13].mxu0 }
 0x873   :  { %v636_v62 = vadd.f32 %v630_v60, %v161_v57  ;;  %v632_v63 = vpop.f32.mrb[14].mxu0 }
 0x874   :  { %v637_v0 = vmul.f32 0.5, %v635_v59  ;;  %v633_v2 = vpop.f32.mrb[15].mxu0 }
 0x875   :  { %v638_v3 = vmul.f32 %v636_v62, %v1490_v42 }
 0x876   :  { %1300 = vtanh.f32 %v637_v0 }
 0x877   :  { %1302 = vtanh.f32 %v638_v3 }
 0x880   :  { %v1301_v4 = vpop.eup %1300 }
 0x881   :  { %v1303_v6 = vpop.eup %1302  ;;  %v641_v9 = vmul.f32 0.5, %v1301_v4 }
 0x882   :  { %v642_v12 = vmul.f32 %v1303_v6, %v1490_v42 }
 0x883   :  { %v643_v17 = vadd.f32 0.5, %v641_v9 }
 0x884   :  { %v644_v16 = vadd.f32 %v642_v12, %v1493_v51 }
 0x885   :  { %v645_v21 = vmul.f32 %v643_v17, %v568_v50  ;;  %v169_v50 = vadd.f32 %v1476_v30, %v1482_v34 }
 0x886   :  { %v646_v18 = vmul.f32 %v644_v16, %v643_v17 }
 0x888   :  { %648 = vrot.lane.b32.xlu0 %v646_v18, %s1326_s3 }
 0x8fa   :  { %v649_v23 = vpop.permute.xlu0 %648 }
 0x8fb   :  { %v651_v26 = vadd.f32 %v649_v23, %v645_v21 }
 0x8fd   :  { %1304 = vtanh.f32 %v651_v26 }
 0x907   :  { %v1305_v27 = vpop.eup %1304 }
 0x908   :  { %v1588_v28 = vmul.f32 %v1305_v27, %v644_v16 }
 0x90a   :  { %v670_v29 = vpack.c.bf16 %v1588_v28, %v1588_v28 }
 0x90c   :  { %672 = vrot.lane.b32.xlu1 %v670_v29, %s1326_s3 }
 0x97e   :  { %v673_v24 = vpop.permute.xlu1 %672 }
 0x97f   :  { %1182 = vmatmul.mubr.msk.bf16.vlgmr.msra.gmra.mrb[20].mxu1 %vm259_vm2, %v673_v24 }
 0x980   :  { %844 = vmatpush1.bf16.msra.mxu1 %v1393_v7  ;;  %875 = vmatprep.mubr.bf16.mxu1 %v1324_v1  ;;  %v165_v7 = vadd.f32 %v1471_v22, %v1486_v36 }
 0x981   :  { %845 = vmatprep.subr.bf16.mxu1 %v1399_v8 }
 0x984   :  { %846 = vmatpush1.bf16.msra.mxu1 %v1410_v10 }
 0x985   :  { %847 = vmatprep.subr.bf16.mxu1 %v1417_v11 }
 0x988   :  { %848 = vmatpush1.bf16.msra.mxu1 %v1430_v13 }
 0x989   :  { %849 = vmatprep.subr.bf16.mxu1 %v1436_v14 }
 0x98c   :  { %850 = vmatpush1.bf16.msra.mxu1 %v1445_v15 }
 0xa52   :  { %v711_v33 = vpop.f32.mrb[20].mxu1 }
 0xa53   :  { %v718_v1 = vadd.f32 %v711_v33, %v163_v25  ;;  %v713_v37 = vpop.f32.mrb[21].mxu1  ;;  %v173_v25 = vadd.f32 %v1480_v32, %v1482_v34 }
 0xa54   :  { %v719_v8 = vadd.f32 %v713_v37, %v165_v7  ;;  %v715_v38 = vpop.f32.mrb[22].mxu1  ;;  %v175_v7 = vadd.f32 %v1484_v35, %v1486_v36 }
 0xa55   :  { %v720_v10 = vmul.f32 0.5, %v718_v1  ;;  %v716_v39 = vpop.f32.mrb[23].mxu1 }
 0xa56   :  { %v721_v11 = vmul.f32 %v719_v8, %v1490_v42 }
 0xa57   :  { %1306 = vtanh.f32 %v720_v10 }
 0xa58   :  { %1308 = vtanh.f32 %v721_v11 }
 0xa61   :  { %v1307_v13 = vpop.eup %1306 }
 0xa62   :  { %v1309_v14 = vpop.eup %1308  ;;  %v724_v15 = vmul.f32 0.5, %v1307_v13 }
 0xa63   :  { %v725_v40 = vmul.f32 %v1309_v14, %v1490_v42 }
 0xa64   :  { %v726_v19 = vadd.f32 0.5, %v724_v15 }
 0xa65   :  { %v727_v43 = vadd.f32 %v725_v40, %v1493_v51 }
 0xa66   :  { %v728_v44 = vmul.f32 %v726_v19, %v651_v26 }
 0xa67   :  { %v729_v22 = vmul.f32 %v727_v43, %v726_v19 }
 0xa69   :  { %731 = vrot.lane.b32.xlu0 %v729_v22, %s1326_s3  ;;  %v1272_v22 = vld [vmem:[%s1737_s5] sm:$0xff]  }
 0xa6a   :  { %1210 = vmatprep.subr.bf16.mxu0 %v1272_v22 }
 0xadb   :  { %v732_v5 = vpop.permute.xlu0 %731 }
 0xadc   :  { %v734_v45 = vadd.f32 %v732_v5, %v728_v44  ;;  %v1274_v5 = vld [vmem:[%s1738_s4] sm:$0xff]  }
 0xade   :  { %1310 = vtanh.f32 %v734_v45 }
 0xae8   :  { %v1311_v46 = vpop.eup %1310 }
 0xae9   :  { %v1610_v47 = vmul.f32 %v1311_v46, %v727_v43 }
 0xaeb   :  { %v753_v48 = vpack.c.bf16 %v1610_v47, %v1610_v47 }
 0xaed   :  { %755 = vrot.lane.b32.xlu1 %v753_v48, %s1326_s3 }
 0xb5f   :  { %v756_v49 = vpop.permute.xlu1 %755 }
 0xb60   :  { %1183 = vmatmul.mubr.msk.bf16.vlgmr.msra.gmra.mrb[16].mxu0 %vm259_vm2, %v756_v49 }
 0xb61   :  { %1211 = vmatpush3.bf16.msra.mxu0 %v1272_v22 }
 0xc33   :  { %v794_v54 = vpop.f32.mrb[16].mxu0 }
 0xc34   :  { %v801_v55 = vadd.f32 %v794_v54, %v169_v50  ;;  %v796_v56 = vpop.f32.mrb[17].mxu0 }
 0xc35   :  { %v802_v57 = vadd.f32 %v796_v56, %v171_v52  ;;  %v798_v58 = vpop.f32.mrb[18].mxu0 }
 0xc36   :  { %v803_v59 = vmul.f32 0.5, %v801_v55  ;;  %v799_v60 = vpop.f32.mrb[19].mxu0  ;;  %v1275_v55 = vld [vmem:[%s1738_s4 + $0x8] sm:$0xff]  }
 0xc37   :  { %v804_v62 = vmul.f32 %v802_v57, %v1490_v42 }
 0xc38   :  { %1312 = vtanh.f32 %v803_v59 }
 0xc39   :  { %1314 = vtanh.f32 %v804_v62 }
 0xc42   :  { %v1313_v63 = vpop.eup %1312 }
 0xc43   :  { %v1315_v0 = vpop.eup %1314  ;;  %v807_v2 = vmul.f32 0.5, %v1313_v63 }
 0xc44   :  { %v808_v3 = vmul.f32 %v1315_v0, %v1490_v42 }
 0xc45   :  { %v809_v30 = vadd.f32 0.5, %v807_v2 }
 0xc46   :  { %v810_v4 = vadd.f32 %v808_v3, %v1493_v51 }
 0xc47   :  { %v811_v6 = vmul.f32 %v809_v30, %v734_v45 }
 0xc48   :  { %v812_v31 = vmul.f32 %v810_v4, %v809_v30 }
 0xc4a   :  { %814 = vrot.lane.b32.xlu0 %v812_v31, %s1326_s3 }
 0xcbc   :  { %v815_v9 = vpop.permute.xlu0 %814 }
 0xcbd   :  { %v817_v12 = vadd.f32 %v815_v9, %v811_v6 }
 0xcbf   :  { %1316 = vtanh.f32 %v817_v12 }
 0xcc9   :  { %v1317_v17 = vpop.eup %1316 }
 0xcca   :  { %v819_v16 = vmul.f32 %v1317_v17, %v810_v4 }
 0xccc   :  { %v836_v18 = vpack.c.bf16 %v819_v16, %v819_v16 }
 0xcce   :  { %838 = vrot.lane.b32.xlu1 %v836_v18, %s1326_s3 }
 0xcd2   :  { %826 = vrot.lane.b32.xlu1 %v819_v16, %s1327_s0 }
 0xcd6   :  { %660 = vrot.lane.b32.xlu1 %v1588_v28, %s1327_s0 }
 0xcda   :  { %494 = vrot.lane.b32.xlu1 %v1545_v20, %s1327_s0 }
 0xcde   :  { %328 = vrot.lane.b32.xlu1 %v1498_v61, %s1327_s0 }
 0xce2   :  { %324 = vrot.lane.b32.xlu1 %v1498_v61, %s1326_s3 }
 0xce6   :  { %489 = vrot.lane.b32.xlu1 %v1545_v20, %s1326_s3 }
 0xcea   :  { %655 = vrot.lane.b32.xlu1 %v1588_v28, %s1326_s3 }
 0xcee   :  { %821 = vrot.lane.b32.xlu1 %v819_v16, %s1326_s3 }
 0xd40   :  { %v839_v21 = vpop.permute.xlu1 %838 }
 0xd41   :  { %1184 = vmatmul.mubr.msk.bf16.vlgmr.msra.gmra.mrb[24].mxu1 %vm259_vm2, %v839_v21 }
 0xd44   :  { %v827_v23 = vpop.permute.xlu1 %826 }
 0xd45   :  { %830 = vst.msk [vmem:[#allocation4 + $0x8] sm:$0xff] %vm91_vm0, %v827_v23 }
 0xd48   :  { %v661_v26 = vpop.permute.xlu1 %660 }
 0xd49   :  { %664 = vst.msk [vmem:[#allocation4 + $0x18] sm:$0xff] %vm91_vm0, %v661_v26 }
 0xd4c   :  { %v495_v27 = vpop.permute.xlu1 %494  ;;  %v930_v50 = vld [vmem:[#allocation4 + $0x8] sm:$0xff] }
 0xd4d   :  { %498 = vst.msk [vmem:[#allocation4 + $0x28] sm:$0xff] %vm91_vm0, %v495_v27  ;;  %v1197_v27 = vld [vmem:[%s1739_s6] ss:$0 sm:$0xff] }
 0xd50   :  { %v329_v61 = vpop.permute.xlu1 %328  ;;  %v932_v54 = vld [vmem:[#allocation4 + $0x18] sm:$0xff] }
 0xd51   :  { %332 = vst.msk [vmem:[#allocation4 + $0x38] sm:$0xff] %vm91_vm0, %v329_v61 }
 0xd54   :  { %v325_v20 = vpop.permute.xlu1 %324  ;;  %v934_v58 = vld [vmem:[#allocation4 + $0x28] sm:$0xff] }
 0xd55   :  { %327 = vst.msk [vmem:[#allocation3] sm:$0xff] %vm91_vm0, %v325_v20 }
 0xd58   :  { %v490_v28 = vpop.permute.xlu1 %489  ;;  %v936_v63 = vld [vmem:[#allocation4 + $0x38] sm:$0xff] }
 0xd59   :  { %493 = vst.msk [vmem:[#allocation3 + $0x10] sm:$0xff] %vm91_vm0, %v490_v28 }
 0xd5c   :  { %v656_v29 = vpop.permute.xlu1 %655  ;;  %v913_v3 = vld [vmem:[#allocation3] sm:$0xff] }
 0xd5d   :  { %659 = vst.msk [vmem:[#allocation3 + $0x20] sm:$0xff] %vm91_vm0, %v656_v29 }
 0xd60   :  { %v822_v24 = vpop.permute.xlu1 %821  ;;  %v915_v6 = vld [vmem:[#allocation3 + $0x10] sm:$0xff] }
 0xd61   :  { %825 = vst.msk [vmem:[#allocation3 + $0x30] sm:$0xff] %vm91_vm0, %v822_v24 }
 0xd64   :  { %v917_v17 = vld [vmem:[#allocation3 + $0x20] sm:$0xff] }
 0xd68   :  { %v919_v21 = vld [vmem:[#allocation3 + $0x30] sm:$0xff] }
 0xe14   :  { %v877_v33 = vpop.f32.mrb[24].mxu1 }
 0xe15   :  { %v884_v1 = vadd.f32 %v877_v33, %v173_v25  ;;  %v879_v37 = vpop.f32.mrb[25].mxu1 }
 0xe16   :  { %v885_v8 = vadd.f32 %v879_v37, %v175_v7  ;;  %v881_v38 = vpop.f32.mrb[26].mxu1 }
 0xe17   :  { %v886_v10 = vmul.f32 0.5, %v884_v1  ;;  %v882_v39 = vpop.f32.mrb[27].mxu1 }
 0xe18   :  { %v887_v11 = vmul.f32 %v885_v8, %v1490_v42 }
 0xe19   :  { %1318 = vtanh.f32 %v886_v10 }
 0xe1a   :  { %1320 = vtanh.f32 %v887_v11 }
 0xe23   :  { %v1319_v13 = vpop.eup %1318 }
 0xe24   :  { %v1321_v14 = vpop.eup %1320  ;;  %v890_v15 = vmul.f32 0.5, %v1319_v13 }
 0xe25   :  { %v891_v40 = vmul.f32 %v1321_v14, %v1490_v42  ;;  %v1273_v42 = vld [vmem:[%s1737_s5 + $0x8] sm:$0xff]  }
 0xe26   :  { %v892_v32 = vadd.f32 0.5, %v890_v15  ;;  %1212 = vmatprep.subr.bf16.mxu0 %v1273_v42 }
 0xe27   :  { %v893_v34 = vadd.f32 %v891_v40, %v1493_v51  ;;  %1213 = vmatpush3.bf16.msra.mxu0 %v1273_v42 }
 0xe28   :  { %v894_v36 = vmul.f32 %v892_v32, %v817_v12  ;;  %1222 = vmatprep.subr.bf16.mxu0 %v1274_v5 }
 0xe29   :  { %v895_v35 = vmul.f32 %v893_v34, %v892_v32 }
 0xe2b   :  { %897 = vrot.lane.b32.xlu0 %v895_v35, %s1326_s3 }
 0xe9d   :  { %v898_v19 = vpop.permute.xlu0 %897 }
 0xe9e   :  { %v900_v43 = vadd.f32 %v898_v19, %v894_v36 }
 0xea0   :  { %1322 = vtanh.f32 %v900_v43 }
 0xeaa   :  { %v1323_v44 = vpop.eup %1322 }
 0xeab   :  { %v902_v51 = vmul.f32 %v1323_v44, %v893_v34 }
 0xead   :  { %909 = vrot.lane.b32.xlu0 %v902_v51, %s1327_s0 }
 0xeb1   :  { %743 = vrot.lane.b32.xlu0 %v1610_v47, %s1327_s0 }
 0xeb5   :  { %577 = vrot.lane.b32.xlu0 %v1566_v53, %s1327_s0 }
 0xeb9   :  { %411 = vrot.lane.b32.xlu0 %v1524_v41, %s1327_s0 }
 0xebd   :  { %406 = vrot.lane.b32.xlu0 %v1524_v41, %s1326_s3 }
 0xec1   :  { %572 = vrot.lane.b32.xlu0 %v1566_v53, %s1326_s3 }
 0xec5   :  { %738 = vrot.lane.b32.xlu0 %v1610_v47, %s1326_s3 }
 0xec9   :  { %904 = vrot.lane.b32.xlu0 %v902_v51, %s1326_s3 }
 0xf1f   :  { %v910_v45 = vpop.permute.xlu0 %909 }
 0xf20   :  { %912 = vst.msk [vmem:[#allocation4] sm:$0xff] %vm91_vm0, %v910_v45 }
 0xf23   :  { %v744_v46 = vpop.permute.xlu0 %743 }
 0xf24   :  { %747 = vst.msk [vmem:[#allocation4 + $0x10] sm:$0xff] %vm91_vm0, %v744_v46 }
 0xf27   :  { %v578_v48 = vpop.permute.xlu0 %577  ;;  %v929_v49 = vld [vmem:[#allocation4] sm:$0xff] }
 0xf28   :  { %581 = vst.msk [vmem:[#allocation4 + $0x20] sm:$0xff] %vm91_vm0, %v578_v48  ;;  %v937_v41 = vpack.c.bf16 %v930_v50, %v929_v49 }
 0xf2a   :  { %1214 = vmatprep.mubr.msk.bf16.mxu0 %vm91_vm0, %v937_v41 }
 0xf2b   :  { %v412_v53 = vpop.permute.xlu0 %411  ;;  %v931_v52 = vld [vmem:[#allocation4 + $0x10] sm:$0xff] }
 0xf2c   :  { %415 = vst.msk [vmem:[#allocation4 + $0x30] sm:$0xff] %vm91_vm0, %v412_v53  ;;  %v938_v47 = vpack.c.bf16 %v932_v54, %v931_v52 }
 0xf2e   :  { %1215 = vmatmul.mubr.msk.bf16.vlgmr.msra.gmra.mrb[20].mxu0 %vm91_vm0, %v938_v47 }
 0xf2f   :  { %1223 = vmatpush3.bf16.msra.mxu0 %v1274_v5  ;;  %v407_v56 = vpop.permute.xlu0 %406  ;;  %v933_v57 = vld [vmem:[#allocation4 + $0x20] sm:$0xff] }
 0xf30   :  { %410 = vst.msk [vmem:[#allocation3 + $0x8] sm:$0xff] %vm91_vm0, %v407_v56  ;;  %v939_v59 = vpack.c.bf16 %v934_v58, %v933_v57  ;;  %1224 = vmatprep.subr.bf16.mxu0 %v1275_v55 }
 0xf32   :  { %1218 = vmatprep.mubr.msk.bf16.mxu0 %vm91_vm0, %v939_v59 }
 0xf33   :  { %v573_v60 = vpop.permute.xlu0 %572  ;;  %v935_v62 = vld [vmem:[#allocation4 + $0x30] sm:$0xff]  ;;  %1225 = vmatpush3.bf16.msra.mxu0 %v1275_v55 }
 0xf34   :  { %576 = vst.msk [vmem:[#allocation3 + $0x18] sm:$0xff] %vm91_vm0, %v573_v60  ;;  %v940_v0 = vpack.c.bf16 %v936_v63, %v935_v62 }
 0xf36   :  { %1219 = vmatmul.mubr.msk.bf16.gmra.mrb[24].mxu0 %vm91_vm0, %v940_v0 }
 0xf37   :  { %v739_v2 = vpop.permute.xlu0 %738  ;;  %v914_v30 = vld [vmem:[#allocation3 + $0x8] sm:$0xff] }
 0xf38   :  { %742 = vst.msk [vmem:[#allocation3 + $0x28] sm:$0xff] %vm91_vm0, %v739_v2  ;;  %v921_v4 = vpack.c.bf16 %v914_v30, %v913_v3 }
 0xf3a   :  { %1226 = vmatprep.mubr.msk.bf16.mxu0 %vm91_vm0, %v921_v4 }
 0xf3b   :  { %v905_v31 = vpop.permute.xlu0 %904  ;;  %v916_v9 = vld [vmem:[#allocation3 + $0x18] sm:$0xff] }
 0xf3c   :  { %908 = vst.msk [vmem:[#allocation3 + $0x38] sm:$0xff] %vm91_vm0, %v905_v31  ;;  %v922_v12 = vpack.c.bf16 %v916_v9, %v915_v6 }
 0xf3e   :  { %1227 = vmatmul.mubr.msk.bf16.vlgmr.msra.gmra.mrb[20].mxu0 %vm91_vm0, %v922_v12 }
 0xf3f   :  { %v918_v16 = vld [vmem:[#allocation3 + $0x28] sm:$0xff] }
 0xf40   :  { %v923_v18 = vpack.c.bf16 %v918_v16, %v917_v17 }
 0xf42   :  { %1230 = vmatprep.mubr.msk.bf16.mxu0 %vm91_vm0, %v923_v18 }
 0xf43   :  { %v920_v23 = vld [vmem:[#allocation3 + $0x38] sm:$0xff] }
 0xf44   :  { %v924_v26 = vpack.c.bf16 %v920_v23, %v919_v21 }
 0xf46   :  { %1231 = vmatmul.mubr.msk.bf16.gmra.mrb[24].mxu0 %vm91_vm0, %v924_v26 }
0x1011   :  { %v1228_v61 = vpop.f32.mrb[20].mxu0 }
0x1012   :  { %v1132_v20 = vadd.f32 %v1228_v61, %v1197_v27  ;;  %v1092_v28 = vpop.f32.mrb[21].mxu0 }
0x1013   :  { %v1130_v29 = vadd.f32 %v1197_v27, %v1092_v28  ;;  %v1229_v24 = vpop.f32.mrb[22].mxu0 }
0x1014   :  { %1141 = vst.msk [vmem:[%s1740_s7 + $0x10] sm:$0xff] %vm1138_vm3, %v1132_v20  ;;  %v1133_v25 = vadd.f32 %v1229_v24, %v1197_v27  ;;  %v1095_v7 = vpop.f32.mrb[23].mxu0 }
0x1015   :  { %1139 = vst.msk [vmem:[%s1740_s7] sm:$0xff] %vm1138_vm3, %v1130_v29  ;;  %v1131_v33 = vadd.f32 %v1197_v27, %v1095_v7 }
0x1016   :  { %1142 = vst.msk [vmem:[%s1740_s7 + $0x18] sm:$0xff] %vm1138_vm3, %v1133_v25 }
0x1017   :  { %1140 = vst.msk [vmem:[%s1740_s7 + $0x8] sm:$0xff] %vm1138_vm3, %v1131_v33 }
0x1019   :  { %v1232_v1 = vpop.f32.mrb[24].mxu0 }
0x101a   :  { %v1136_v37 = vadd.f32 %v1232_v1, %v1197_v27  ;;  %v1108_v8 = vpop.f32.mrb[25].mxu0 }
0x101b   :  { %v1134_v38 = vadd.f32 %v1197_v27, %v1108_v8  ;;  %v1233_v10 = vpop.f32.mrb[26].mxu0 }
0x101c   :  { %1145 = vst.msk [vmem:[%s1740_s7 + $0x30] sm:$0xff] %vm1138_vm3, %v1136_v37  ;;  %v1137_v39 = vadd.f32 %v1233_v10, %v1197_v27  ;;  %v1111_v11 = vpop.f32.mrb[27].mxu0 }
0x101d   :  { %1143 = vst.msk [vmem:[%s1740_s7 + $0x20] sm:$0xff] %vm1138_vm3, %v1134_v38  ;;  %v1135_v13 = vadd.f32 %v1197_v27, %v1111_v11 }
0x101e   :  { %1146 = vst.msk [vmem:[%s1740_s7 + $0x38] sm:$0xff] %vm1138_vm3, %v1137_v39 }
0x101f   :  { %1144 = vst.msk [vmem:[%s1740_s7 + $0x28] sm:$0xff] %vm1138_vm3, %v1135_v13 }

</bundles_post_ra>
